<compile_context>
chip_gen: v7x
topology: tpu7x:2x2x1
jax: 0.10.0
libtpu: 0.0.40
codegen_flags: <defaults>
</compile_context>

<pallas_src>
import functools

import numpy as np
import jax
import jax.numpy as jnp
from jax.experimental import pallas as pl
from jax.experimental.pallas import tpu as pltpu


def _recip_refined(x):
    """EUP approximate reciprocal + one Newton step (rel. error ~1e-7)."""
    r = pl.reciprocal(x, approx=True)
    return r * (2.0 - x * r)


def _dino_fused_kernel(scalars_ref, t_ref, s_ref, c_ref, loss_ref, tsum_ref, *,
                       ncrops, ntcrops, batch):
    """Single invocation: full teacher/student/center blocks resident in VMEM."""
    inv_teacher_temp = scalars_ref[0]   # 1 / teacher_temp          (SMEM scalar)
    inv_student_temp = scalars_ref[1]   # 1 / student_temp          (SMEM scalar)
    final_scale = scalars_ref[2]        # 1 / (batch * n_loss_terms) (SMEM scalar)

    # ---- teacher block: column-sum (for center EMA) + softmax, once --------
    t_raw = t_ref[...].astype(jnp.float32)
    tsum_ref[...] = jnp.sum(t_raw, axis=0, keepdims=True)   # lane-dense (1, D)

    t = (t_raw - c_ref[...].astype(jnp.float32)) * inv_teacher_temp
    t = t - jnp.max(t, axis=-1, keepdims=True)
    et = jnp.exp(t)
    q_all = et * _recip_refined(jnp.sum(et, axis=-1, keepdims=True))

    # ---- student: softmax / log_softmax of (student / temp), once ----------
    s = s_ref[...].astype(jnp.float32) * inv_student_temp
    s = s - jnp.max(s, axis=-1, keepdims=True)
    es = jnp.exp(s)
    denom = jnp.sum(es, axis=-1, keepdims=True)
    p_all = es * _recip_refined(denom)
    logp_all = s - jnp.log(denom)

    # ---- pairwise terms into ONE (B, D) accumulator; diagonal skipped ------
    acc = jnp.zeros((batch, q_all.shape[-1]), jnp.float32)
    for iq in range(ntcrops):
        q = q_all[iq * batch:(iq + 1) * batch, :]
        nq = -q
        for v in range(ncrops):
            if v == iq:
                continue
            p = p_all[v * batch:(v + 1) * batch, :]
            logp = logp_all[v * batch:(v + 1) * batch, :]
            acc = acc + jnp.exp(-jnp.abs(q - p)) * nq * logp

    # Single cross-lane + cross-sublane reduction, scaled once, stored once.
    loss_ref[...] = jnp.sum(acc, keepdims=True) * final_scale


def margin_dino_loss(student_output, teacher_output, center, epoch, *,
                     ncrops, ntcrops, student_temp, teacher_temp_schedule,
                     center_momentum=0.9):
    """Returns (total_loss, new_center), mirroring forward() + update_center()."""
    NS, D = student_output.shape
    NT, D2 = teacher_output.shape
    assert D == D2
    B = NS // ncrops
    assert NT == ntcrops * B and NS == ncrops * B
    # Sublane-aligned per-crop slices => pure vreg selection in the pair loop.
    assert B % 8 == 0, "per-crop batch must be a multiple of 8 (f32 sublane tile)"

    # Number of (iq, v) pairs with v != iq, matching the PyTorch double loop.
    n_loss_terms = sum(1 for iq in range(ntcrops) for v in range(ncrops) if v != iq)

    teacher_temp = float(teacher_temp_schedule[epoch])
    # Scalar-prefetched (SMEM) constants -> no recompile when temp changes.
    scalars = jnp.array([1.0 / teacher_temp,
                         1.0 / float(student_temp),
                         1.0 / (float(B) * float(n_loss_terms))],
                        dtype=jnp.float32)

    kernel = functools.partial(_dino_fused_kernel,
                               ncrops=ncrops, ntcrops=ntcrops, batch=B)

    # Entire problem in one grid step; block shapes equal the full arrays, so
    # the (8,128) divisibility rule is automatically satisfied for any B, D.
    loss_sum, tsum = pl.pallas_call(
        kernel,
        out_shape=(jax.ShapeDtypeStruct((1, 1), jnp.float32),
                   jax.ShapeDtypeStruct((1, D), jnp.float32)),
        grid_spec=pltpu.PrefetchScalarGridSpec(
            num_scalar_prefetch=1,
            grid=(1,),
            in_specs=[
                pl.BlockSpec((NT, D), lambda i, sc: (0, 0)),   # teacher (all crops)
                pl.BlockSpec((NS, D), lambda i, sc: (0, 0)),   # student (all crops)
                pl.BlockSpec((1, D), lambda i, sc: (0, 0)),    # center
            ],
            out_specs=[
                pl.BlockSpec((1, 1), lambda i, sc: (0, 0)),    # loss (already /n_terms)
                pl.BlockSpec((1, D), lambda i, sc: (0, 0)),    # teacher column-sum
            ],
        ),
        compiler_params=pltpu.CompilerParams(
            dimension_semantics=("arbitrary",)),
    )(scalars, teacher_output, student_output, center)

    total_loss = loss_sum[0, 0]

    # update_center: dist.all_reduce on a single device is identity.
    # TODO(synk): multi-host all_reduce of batch_center is not modeled (world_size == 1).
    batch_center = tsum / float(NT)
    new_center = (center.astype(jnp.float32) * center_momentum
                  + batch_center * (1.0 - center_momentum))
    return total_loss, new_center


def _reference_loss(student_output, teacher_output, center, epoch, *,
                    ncrops, ntcrops, student_temp, teacher_temp_schedule):
    """Pure-JAX reference of the PyTorch forward, for verification."""
    temp = float(teacher_temp_schedule[epoch])
    s = student_output.astype(jnp.float32) / student_temp
    student_chunks = jnp.split(s, ncrops, axis=0)
    q_all = jax.nn.softmax(
        (teacher_output.astype(jnp.float32) - center) / temp, axis=-1)
    teacher_chunks = jnp.split(q_all, ntcrops, axis=0)
    total, n = 0.0, 0
    for iq, q in enumerate(teacher_chunks):
        for v in range(len(student_chunks)):
            if v == iq:
                continue
            p = jax.nn.softmax(student_chunks[v], axis=-1)
            logp = jax.nn.log_softmax(student_chunks[v], axis=-1)
            loss = jnp.sum(jnp.exp(-jnp.abs(q - p)) * (-q) * logp, axis=-1)
            total = total + jnp.mean(loss)
            n += 1
    return total / n


if __name__ == "__main__":
    # Module hyper-parameters (shapes from __init__ / forward).
    out_dim = 128
    ncrops = 4       # number of student crops
    ntcrops = 2      # number of teacher crops
    B = 8            # per-crop batch size (multiple of 8 -> sublane aligned)
    warmup_teacher_temp = 0.04
    teacher_temp = 0.07
    warmup_teacher_temp_epochs = 5
    nepochs = 20
    student_temp = 0.1
    center_momentum = 0.9
    epoch = 3

    teacher_temp_schedule = np.concatenate((
        np.linspace(warmup_teacher_temp, teacher_temp, warmup_teacher_temp_epochs),
        np.ones(nepochs - warmup_teacher_temp_epochs) * teacher_temp))

    key = jax.random.PRNGKey(0)
    k1, k2 = jax.random.split(key)
    student_output = jax.random.normal(k1, (ncrops * B, out_dim), dtype=jnp.float32)
    teacher_output = jax.random.normal(k2, (ntcrops * B, out_dim), dtype=jnp.float32)
    center = jnp.zeros((1, out_dim), dtype=jnp.float32)  # register_buffer init

    loss, new_center = margin_dino_loss(
        student_output, teacher_output, center, epoch,
        ncrops=ncrops, ntcrops=ntcrops, student_temp=student_temp,
        teacher_temp_schedule=teacher_temp_schedule,
        center_momentum=center_momentum)
    jax.block_until_ready((loss, new_center))

    # Verify loss against the pure-JAX reference of the PyTorch forward.
    ref = _reference_loss(
        student_output, teacher_output, center, epoch,
        ncrops=ncrops, ntcrops=ntcrops, student_temp=student_temp,
        teacher_temp_schedule=teacher_temp_schedule)
    np.testing.assert_allclose(np.asarray(loss), np.asarray(ref),
                               rtol=1e-4, atol=1e-5)

    # Verify the fused center update (update_center with world_size == 1).
    batch_center_ref = (jnp.sum(teacher_output, axis=0, keepdims=True)
                        / teacher_output.shape[0])
    center_ref = center * center_momentum + batch_center_ref * (1 - center_momentum)
    np.testing.assert_allclose(np.asarray(new_center), np.asarray(center_ref),
                               rtol=1e-5, atol=1e-6)

    print("KERNEL_OK")
</pallas_src>

<mosaic_0001>
module attributes {stable_mosaic.version = 11 : i64} {
  func.func @_dino_fused_kernel(%arg0: i32, %arg1: memref<3xf32, #tpu.memory_space<smem>>, %arg2: memref<16x128xf32, #tpu.memory_space<vmem>>, %arg3: memref<32x128xf32, #tpu.memory_space<vmem>>, %arg4: memref<1x128xf32, #tpu.memory_space<vmem>>, %arg5: memref<1x1xf32, #tpu.memory_space<vmem>>, %arg6: memref<1x128xf32, #tpu.memory_space<vmem>>) attributes {dimension_semantics = [#tpu.dimension_semantics<arbitrary>], iteration_bounds = array<i64: 1>, scalar_prefetch = 1 : i64, scratch_operands = 0 : i64, tpu.core_type = #tpu.core_type<tc>, window_params = [{pipeline_mode = #tpu.pipeline_mode<synchronous>, transform_indices = @transform_0, window_bounds = array<i64: 16, 128>}, {pipeline_mode = #tpu.pipeline_mode<synchronous>, transform_indices = @transform_1, window_bounds = array<i64: 32, 128>}, {pipeline_mode = #tpu.pipeline_mode<synchronous>, transform_indices = @transform_2, window_bounds = array<i64: 1, 128>}, {pipeline_mode = #tpu.pipeline_mode<synchronous>, transform_indices = @transform_3, window_bounds = array<i64: 1, 1>}, {pipeline_mode = #tpu.pipeline_mode<synchronous>, transform_indices = @transform_4, window_bounds = array<i64: 1, 128>}]} {
    %c0 = arith.constant 0 : index
    %0 = memref.load %arg1[%c0] : memref<3xf32, #tpu.memory_space<smem>>
    %c1 = arith.constant 1 : index
    %1 = memref.load %arg1[%c1] : memref<3xf32, #tpu.memory_space<smem>>
    %c2 = arith.constant 2 : index
    %2 = memref.load %arg1[%c2] : memref<3xf32, #tpu.memory_space<smem>>
    %c0_0 = arith.constant 0 : index
    %c0_1 = arith.constant 0 : index
    %3 = vector.load %arg2[%c0_0, %c0_1] : memref<16x128xf32, #tpu.memory_space<vmem>>, vector<16x128xf32>
    %cst = arith.constant dense<0.000000e+00> : vector<128xf32>
    %4 = vector.multi_reduction <add>, %3, %cst [0] : vector<16x128xf32> to vector<128xf32>
    %5 = vector.shape_cast %4 : vector<128xf32> to vector<1x128xf32>
    %c0_2 = arith.constant 0 : index
    %c0_3 = arith.constant 0 : index
    %6 = vector.load %arg6[%c0_2, %c0_3] : memref<1x128xf32, #tpu.memory_space<vmem>>, vector<1x128xf32>
    tpu.vector_store %arg6[%c0_2, %c0_3], %5 {strides = array<i32>} : memref<1x128xf32, #tpu.memory_space<vmem>>, vector<1x128xf32>,
    %c0_4 = arith.constant 0 : index
    %c0_5 = arith.constant 0 : index
    %7 = vector.load %arg4[%c0_4, %c0_5] : memref<1x128xf32, #tpu.memory_space<vmem>>, vector<1x128xf32>
    %8 = vector.broadcast %7 : vector<1x128xf32> to vector<16x128xf32>
    %9 = arith.subf %3, %8 : vector<16x128xf32>
    %10 = vector.broadcast %0 : f32 to vector<16x128xf32>
    %11 = arith.mulf %9, %10 : vector<16x128xf32>
    %cst_6 = arith.constant dense<0xFF800000> : vector<16xf32>
    %12 = vector.multi_reduction <maximumf>, %11, %cst_6 [1] : vector<16x128xf32> to vector<16xf32>
    %13 = vector.shape_cast %12 : vector<16xf32> to vector<16x1xf32>
    %14 = vector.broadcast %13 : vector<16x1xf32> to vector<16x128xf32>
    %15 = arith.subf %11, %14 : vector<16x128xf32>
    %16 = math.exp %15 : vector<16x128xf32>
    %cst_7 = arith.constant dense<0.000000e+00> : vector<16xf32>
    %17 = vector.multi_reduction <add>, %16, %cst_7 [1] : vector<16x128xf32> to vector<16xf32>
    %18 = vector.shape_cast %17 : vector<16xf32> to vector<16x1xf32>
    %19 = tpu.reciprocal %18 {approx = true} : vector<16x1xf32> -> vector<16x1xf32>
    %20 = arith.mulf %18, %19 : vector<16x1xf32>
    %cst_8 = arith.constant 2.000000e+00 : f32
    %21 = vector.broadcast %cst_8 : f32 to vector<16x1xf32>
    %22 = arith.subf %21, %20 : vector<16x1xf32>
    %23 = arith.mulf %19, %22 : vector<16x1xf32>
    %24 = vector.broadcast %23 : vector<16x1xf32> to vector<16x128xf32>
    %25 = arith.mulf %16, %24 : vector<16x128xf32>
    %c0_9 = arith.constant 0 : index
    %c0_10 = arith.constant 0 : index
    %26 = vector.load %arg3[%c0_9, %c0_10] : memref<32x128xf32, #tpu.memory_space<vmem>>, vector<32x128xf32>
    %27 = vector.broadcast %1 : f32 to vector<32x128xf32>
    %28 = arith.mulf %26, %27 : vector<32x128xf32>
    %cst_11 = arith.constant dense<0xFF800000> : vector<32xf32>
    %29 = vector.multi_reduction <maximumf>, %28, %cst_11 [1] : vector<32x128xf32> to vector<32xf32>
    %30 = vector.shape_cast %29 : vector<32xf32> to vector<32x1xf32>
    %31 = vector.broadcast %30 : vector<32x1xf32> to vector<32x128xf32>
    %32 = arith.subf %28, %31 : vector<32x128xf32>
    %33 = math.exp %32 : vector<32x128xf32>
    %cst_12 = arith.constant dense<0.000000e+00> : vector<32xf32>
    %34 = vector.multi_reduction <add>, %33, %cst_12 [1] : vector<32x128xf32> to vector<32xf32>
    %35 = vector.shape_cast %34 : vector<32xf32> to vector<32x1xf32>
    %36 = tpu.reciprocal %35 {approx = true} : vector<32x1xf32> -> vector<32x1xf32>
    %37 = arith.mulf %35, %36 : vector<32x1xf32>
    %cst_13 = arith.constant 2.000000e+00 : f32
    %38 = vector.broadcast %cst_13 : f32 to vector<32x1xf32>
    %39 = arith.subf %38, %37 : vector<32x1xf32>
    %40 = arith.mulf %36, %39 : vector<32x1xf32>
    %41 = vector.broadcast %40 : vector<32x1xf32> to vector<32x128xf32>
    %42 = arith.mulf %33, %41 : vector<32x128xf32>
    %43 = math.log %35 : vector<32x1xf32>
    %44 = vector.broadcast %43 : vector<32x1xf32> to vector<32x128xf32>
    %45 = arith.subf %32, %44 : vector<32x128xf32>
    %cst_14 = arith.constant 0.000000e+00 : f32
    %46 = vector.broadcast %cst_14 : f32 to vector<8x128xf32>
    %47 = vector.extract_strided_slice %25 {offsets = [0, 0], sizes = [8, 128], strides = [1, 1]} : vector<16x128xf32> to vector<8x128xf32>
    %cst_15 = arith.constant 0.000000e+00 : f32
    %48 = vector.broadcast %cst_15 : f32 to vector<8x128xf32>
    %49 = arith.subf %48, %47 : vector<8x128xf32>
    %50 = vector.extract_strided_slice %42 {offsets = [8, 0], sizes = [8, 128], strides = [1, 1]} : vector<32x128xf32> to vector<8x128xf32>
    %51 = vector.extract_strided_slice %45 {offsets = [8, 0], sizes = [8, 128], strides = [1, 1]} : vector<32x128xf32> to vector<8x128xf32>
    %52 = arith.subf %47, %50 : vector<8x128xf32>
    %53 = math.absf %52 : vector<8x128xf32>
    %cst_16 = arith.constant 0.000000e+00 : f32
    %54 = vector.broadcast %cst_16 : f32 to vector<8x128xf32>
    %55 = arith.subf %54, %53 : vector<8x128xf32>
    %56 = math.exp %55 : vector<8x128xf32>
    %57 = arith.mulf %56, %49 : vector<8x128xf32>
    %58 = arith.mulf %57, %51 : vector<8x128xf32>
    %59 = arith.addf %46, %58 : vector<8x128xf32>
    %60 = vector.extract_strided_slice %42 {offsets = [16, 0], sizes = [8, 128], strides = [1, 1]} : vector<32x128xf32> to vector<8x128xf32>
    %61 = vector.extract_strided_slice %45 {offsets = [16, 0], sizes = [8, 128], strides = [1, 1]} : vector<32x128xf32> to vector<8x128xf32>
    %62 = arith.subf %47, %60 : vector<8x128xf32>
    %63 = math.absf %62 : vector<8x128xf32>
    %cst_17 = arith.constant 0.000000e+00 : f32
    %64 = vector.broadcast %cst_17 : f32 to vector<8x128xf32>
    %65 = arith.subf %64, %63 : vector<8x128xf32>
    %66 = math.exp %65 : vector<8x128xf32>
    %67 = arith.mulf %66, %49 : vector<8x128xf32>
    %68 = arith.mulf %67, %61 : vector<8x128xf32>
    %69 = arith.addf %59, %68 : vector<8x128xf32>
    %70 = vector.extract_strided_slice %42 {offsets = [24, 0], sizes = [8, 128], strides = [1, 1]} : vector<32x128xf32> to vector<8x128xf32>
    %71 = vector.extract_strided_slice %45 {offsets = [24, 0], sizes = [8, 128], strides = [1, 1]} : vector<32x128xf32> to vector<8x128xf32>
    %72 = arith.subf %47, %70 : vector<8x128xf32>
    %73 = math.absf %72 : vector<8x128xf32>
    %cst_18 = arith.constant 0.000000e+00 : f32
    %74 = vector.broadcast %cst_18 : f32 to vector<8x128xf32>
    %75 = arith.subf %74, %73 : vector<8x128xf32>
    %76 = math.exp %75 : vector<8x128xf32>
    %77 = arith.mulf %76, %49 : vector<8x128xf32>
    %78 = arith.mulf %77, %71 : vector<8x128xf32>
    %79 = arith.addf %69, %78 : vector<8x128xf32>
    %80 = vector.extract_strided_slice %25 {offsets = [8, 0], sizes = [8, 128], strides = [1, 1]} : vector<16x128xf32> to vector<8x128xf32>
    %cst_19 = arith.constant 0.000000e+00 : f32
    %81 = vector.broadcast %cst_19 : f32 to vector<8x128xf32>
    %82 = arith.subf %81, %80 : vector<8x128xf32>
    %83 = vector.extract_strided_slice %42 {offsets = [0, 0], sizes = [8, 128], strides = [1, 1]} : vector<32x128xf32> to vector<8x128xf32>
    %84 = vector.extract_strided_slice %45 {offsets = [0, 0], sizes = [8, 128], strides = [1, 1]} : vector<32x128xf32> to vector<8x128xf32>
    %85 = arith.subf %80, %83 : vector<8x128xf32>
    %86 = math.absf %85 : vector<8x128xf32>
    %cst_20 = arith.constant 0.000000e+00 : f32
    %87 = vector.broadcast %cst_20 : f32 to vector<8x128xf32>
    %88 = arith.subf %87, %86 : vector<8x128xf32>
    %89 = math.exp %88 : vector<8x128xf32>
    %90 = arith.mulf %89, %82 : vector<8x128xf32>
    %91 = arith.mulf %90, %84 : vector<8x128xf32>
    %92 = arith.addf %79, %91 : vector<8x128xf32>
    %93 = vector.extract_strided_slice %42 {offsets = [16, 0], sizes = [8, 128], strides = [1, 1]} : vector<32x128xf32> to vector<8x128xf32>
    %94 = vector.extract_strided_slice %45 {offsets = [16, 0], sizes = [8, 128], strides = [1, 1]} : vector<32x128xf32> to vector<8x128xf32>
    %95 = arith.subf %80, %93 : vector<8x128xf32>
    %96 = math.absf %95 : vector<8x128xf32>
    %cst_21 = arith.constant 0.000000e+00 : f32
    %97 = vector.broadcast %cst_21 : f32 to vector<8x128xf32>
    %98 = arith.subf %97, %96 : vector<8x128xf32>
    %99 = math.exp %98 : vector<8x128xf32>
    %100 = arith.mulf %99, %82 : vector<8x128xf32>
    %101 = arith.mulf %100, %94 : vector<8x128xf32>
    %102 = arith.addf %92, %101 : vector<8x128xf32>
    %103 = vector.extract_strided_slice %42 {offsets = [24, 0], sizes = [8, 128], strides = [1, 1]} : vector<32x128xf32> to vector<8x128xf32>
    %104 = vector.extract_strided_slice %45 {offsets = [24, 0], sizes = [8, 128], strides = [1, 1]} : vector<32x128xf32> to vector<8x128xf32>
    %105 = arith.subf %80, %103 : vector<8x128xf32>
    %106 = math.absf %105 : vector<8x128xf32>
    %cst_22 = arith.constant 0.000000e+00 : f32
    %107 = vector.broadcast %cst_22 : f32 to vector<8x128xf32>
    %108 = arith.subf %107, %106 : vector<8x128xf32>
    %109 = math.exp %108 : vector<8x128xf32>
    %110 = arith.mulf %109, %82 : vector<8x128xf32>
    %111 = arith.mulf %110, %104 : vector<8x128xf32>
    %112 = arith.addf %102, %111 : vector<8x128xf32>
    %113 = vector.shape_cast %112 : vector<8x128xf32> to vector<1x8x128xf32>
    %cst_23 = arith.constant dense<0.000000e+00> : vector<1xf32>
    %114 = vector.multi_reduction <add>, %113, %cst_23 [1, 2] : vector<1x8x128xf32> to vector<1xf32>
    %115 = vector.shape_cast %114 : vector<1xf32> to vector<1x1x1xf32>
    %116 = vector.extract %115[0, 0, 0] : f32 from vector<1x1x1xf32>
    %117 = vector.broadcast %116 : f32 to vector<1x1xf32>
    %118 = vector.broadcast %2 : f32 to vector<1x1xf32>
    %119 = arith.mulf %117, %118 : vector<1x1xf32>
    %c0_24 = arith.constant 0 : index
    %c0_25 = arith.constant 0 : index
    %120 = vector.load %arg5[%c0_24, %c0_25] : memref<1x1xf32, #tpu.memory_space<vmem>>, vector<1x1xf32>
    tpu.vector_store %arg5[%c0_24, %c0_25], %119 {strides = array<i32>} : memref<1x1xf32, #tpu.memory_space<vmem>>, vector<1x1xf32>,
    return
  }
  func.func @transform_0(%arg0: i32, %arg1: memref<3xf32, #tpu.memory_space<smem>>) -> (i32, i32) {
    %c0_i32 = arith.constant 0 : i32
    %c0_i32_0 = arith.constant 0 : i32
    %c0_i32_1 = arith.constant 0 : i32
    return %c0_i32, %c0_i32_0 : i32, i32
  }
  func.func @transform_1(%arg0: i32, %arg1: memref<3xf32, #tpu.memory_space<smem>>) -> (i32, i32) {
    %c0_i32 = arith.constant 0 : i32
    %c0_i32_0 = arith.constant 0 : i32
    %c0_i32_1 = arith.constant 0 : i32
    return %c0_i32, %c0_i32_0 : i32, i32
  }
  func.func @transform_2(%arg0: i32, %arg1: memref<3xf32, #tpu.memory_space<smem>>) -> (i32, i32) {
    %c0_i32 = arith.constant 0 : i32
    %c0_i32_0 = arith.constant 0 : i32
    %c0_i32_1 = arith.constant 0 : i32
    return %c0_i32, %c0_i32_0 : i32, i32
  }
  func.func @transform_3(%arg0: i32, %arg1: memref<3xf32, #tpu.memory_space<smem>>) -> (i32, i32) {
    %c0_i32 = arith.constant 0 : i32
    %c0_i32_0 = arith.constant 0 : i32
    %c0_i32_1 = arith.constant 0 : i32
    return %c0_i32, %c0_i32_0 : i32, i32
  }
  func.func @transform_4(%arg0: i32, %arg1: memref<3xf32, #tpu.memory_space<smem>>) -> (i32, i32) {
    %c0_i32 = arith.constant 0 : i32
    %c0_i32_0 = arith.constant 0 : i32
    %c0_i32_1 = arith.constant 0 : i32
    return %c0_i32, %c0_i32_0 : i32, i32
  }
}

</mosaic_0001>

<bundles_post_ra>
// kernel: tpu_custom_call.1
= control target key start
LH: loop header
LB: loop body
LE: loop exit
PB: predicated region body
PF: predicated region fallthrough
CT: control target
= control target key end

     0   :  { %s547_s0 = inlined_call_operand.hbm [shape: f32[3], index: 0, kind: input, shape index: {}]   ;;  %s548_s1 = inlined_call_operand.hbm [shape: f32[16,128], index: 1, kind: input, shape index: {}]   ;;  %s549_s2 = inlined_call_operand.hbm [shape: f32[32,128], index: 2, kind: input, shape index: {}]   ;;  %s550_s3 = inlined_call_operand.vmem [shape: f32[1,128], index: 3, kind: input, shape index: {}]   ;;  %s551_s4 = inlined_call_operand.hbm [shape: f32[1,1], index: 4, kind: output, shape index: {0}]   ;;  %s552_s5 = inlined_call_operand.hbm [shape: f32[1,128], index: 5, kind: output, shape index: {1}]  }
   0x1   :  { %s319_s20 = scalar_lea.hbm %s547_s0, 16 }
   0x2   :  { %p320_p0 = scmp.ne.s32.totalorder %s547_s0, %s319_s20  ;;  %p323_p1 = scmp.lt.u32.totalorder %s319_s20, %s547_s0 }
   0x4   :  { %p325_p2 = pnand %p323_p1, %p320_p0 }
   0x6   :  { %328 = shalt.err (!%p325_p2)  }
   0x7   :  { %s427_s25 = smov [#allocation3]  }
   0x8   :  { %12 = dma.hbm_to_smem %s547_s0, 16, %s427_s25, [#allocation2] }
   0x9   :  { %417 = dma.done.wait [#allocation2], 16 }
   0xa   :  { %418 = vsyncadd [#allocation2], 4294967280 }
   0xb   :  { %14 = sfence }
   0xc   :  { %15 = vsyncpa [#allocation5], 0 }
   0xd   :  { %16 = vsyncpa [#allocation8], 0 }
   0xe   :  { %17 = vsyncpa [#allocation6], 0 }
   0xf   :  { %18 = vsyncpa [#allocation11], 0  ;;  %s428_s28 = smov [#allocation4]   ;;  %s329_s7 = scalar_lea.hbm %s548_s1, 256 }
  0x10   :  { %s24_s29 = sshll.u32 %s428_s28, 4  ;;  %p330_p3 = scmp.ne.s32.totalorder %s548_s1, %s329_s7  ;;  %s25_s29 = int_to_ptr.vmem [resolvable:$true] %s24_s29 }
  0x11   :  { %p333_p4 = scmp.lt.u32.totalorder %s329_s7, %s548_s1 }
  0x13   :  { %p335_p5 = pnand %p333_p4, %p330_p3 }
  0x15   :  { %338 = shalt.err (!%p335_p5)
}
  0x16   :  { %s339_s11 = scalar_lea.vmem %s25_s29, 256  ;;  %p344_p7 = scmp.lt.s32.totalorder %s25_s29, %s25_s29 }
  0x17   :  { %p340_p6 = scmp.ne.s32.totalorder %s25_s29, %s339_s11  ;;  %p345_p8 = scmp.lt.s32.totalorder %s339_s11, %s339_s11 }
  0x19   :  { %p346_p9 = por %p345_p8, %p344_p7 }
  0x1b   :  { %p347_p10 = pnand %p346_p9, %p340_p6 }
  0x1d   :  { %350 = shalt.err (!%p347_p10)
}
  0x1e   :  { %s429_s12 = smov 128   ;;  %s430_s13 = smov 8  }
  0x1f   :  { %30 = dma.hbm_to_vmem [thread:$0]  %s548_s1, 256, %s25_s29, [#allocation5], %s429_s12, %s429_s12, %s430_s13  }
  0x20   :  { %s431_s16 = smov [#allocation7]   ;;  %s351_s20 = scalar_lea.hbm %s549_s2, 512 }
  0x21   :  { %s36_s17 = sshll.u32 %s431_s16, 4  ;;  %p352_p11 = scmp.ne.s32.totalorder %s549_s2, %s351_s20  ;;  %s37_s17 = int_to_ptr.vmem [resolvable:$true] %s36_s17 }
  0x22   :  { %p355_p12 = scmp.lt.u32.totalorder %s351_s20, %s549_s2 }
  0x24   :  { %p357_p13 = pnand %p355_p12, %p352_p11 }
  0x26   :  { %360 = shalt.err (!%p357_p13)
}
  0x27   :  { %s361_s25 = scalar_lea.vmem %s37_s17, 512  ;;  %p366_p1 = scmp.lt.s32.totalorder %s37_s17, %s37_s17 }
  0x28   :  { %p362_p0 = scmp.ne.s32.totalorder %s37_s17, %s361_s25  ;;  %p367_p2 = scmp.lt.s32.totalorder %s361_s25, %s361_s25 }
  0x2a   :  { %p368_p3 = por %p367_p2, %p366_p1 }
  0x2c   :  { %p369_p4 = pnand %p368_p3, %p362_p0 }
  0x2e   :  { %372 = shalt.err (!%p369_p4)
}
  0x2f   :  { %42 = dma.hbm_to_vmem [thread:$0]  %s549_s2, 512, %s37_s17, [#allocation8], %s429_s12, %s429_s12, %s430_s13  }
  0x30   :  { %419 = dma.done.wait [#allocation5], 256  }
  0x31   :  { %420 = vsyncadd [#allocation5], 4294967040 }
  0x32   :  { %421 = dma.done.wait [#allocation8], 512  }
  0x33   :  { %422 = vsyncadd [#allocation8], 4294966784  ;;  %s263_s27 = sld [smem:[#allocation3 + $0x1]]  ;;  %s51_s28 = sld [smem:[#allocation3]]  ;;  %v102_v0 = vld [vmem:[#allocation7 + $0x10] sm:$0xff]  ;;  %v101_v2 = vld [vmem:[#allocation7 + $0x8] sm:$0xff] }
  0x34   :  { %v103_v3 = vld [vmem:[#allocation7 + $0x18] sm:$0xff]  ;;  %v54_v6 = vld [vmem:[#allocation4] sm:$0xff]  ;;  %v100_v15 = vld [vmem:[#allocation7] sm:$0xff]  ;;  %s432_s2 = smov [#allocation10]  }
  0x35   :  { %v265_v7 = vld [vmem:[%s550_s3] ss:$0 sm:$0xff]  ;;  %v55_v10 = vld [vmem:[#allocation4 + $0x8] sm:$0xff]  ;;  %s249_s3 = sshll.u32 %s432_s2, 4  ;;  %s250_s3 = int_to_ptr.vmem [resolvable:$true] %s249_s3 }
  0x36   :  { %v71_v9 = vsub.f32 %v54_v6, %v265_v7  ;;  %v503_v12 = vadd.f32 %v55_v10, %v54_v6  ;;  %v72_v13 = vsub.f32 %v55_v10, %v265_v7  ;;  %s373_s6 = scalar_lea.vmem %s250_s3, 16  ;;  %s377_s7 = scalar_lea.vmem %s250_s3, 32 }
  0x37   :  { %p374_p5 = scmp.ne.s32.totalorder %s250_s3, %s373_s6  ;;  %p378_p6 = scmp.lt.s32.totalorder %s250_s3, %s250_s3 }
  0x38   :  { %p379_p7 = scmp.lt.s32.totalorder %s377_s7, %s373_s6 }
  0x39   :  { %v104_v1 = vstv %s263_s27  ;;  %v73_v8 = vstv %s51_s28 }
  0x3a   :  { %v107_v4 = vmul.f32 %v104_v1, %v102_v0  ;;  %v106_v5 = vmul.f32 %v104_v1, %v101_v2  ;;  %v108_v11 = vmul.f32 %v104_v1, %v103_v3  ;;  %v74_v14 = vmul.f32 %v73_v8, %v71_v9  ;;  %p380_p8 = por %p379_p7, %p378_p6 }
  0x3b   :  { %v105_v16 = vmul.f32 %v104_v1, %v100_v15  ;;  %v75_v17 = vmul.f32 %v73_v8, %v72_v13 }
  0x3c   :  { %113 = vmax.xlane.f32.xlu1 %v107_v4  ;;  %111 = vmax.xlane.f32.xlu0 %v106_v5  ;;  %p381_p9 = pnand %p380_p8, %p374_p5 }
  0x40   :  { %115 = vmax.xlane.f32.xlu1 %v108_v11  ;;  %76 = vmax.xlane.f32.xlu0 %v74_v14 }
  0x44   :  { %109 = vmax.xlane.f32.xlu1 %v105_v16  ;;  %78 = vmax.xlane.f32.xlu0 %v75_v17 }
  0xc9   :  { %v114_v18 = vpop.xlane.xlu1 %113  ;;  %v112_v19 = vpop.xlane.xlu0 %111 }
  0xca   :  { %v505_v20 = vsub.f32 %v107_v4, %v114_v18  ;;  %v507_v21 = vsub.f32 %v106_v5, %v112_v19 }
  0xcc   :  { %v125_v22 = vmul.f32 1.442695, %v505_v20  ;;  %v123_v23 = vmul.f32 1.442695, %v507_v21 }
  0xcd   :  { %v116_v24 = vpop.xlane.xlu1 %115  ;;  %v77_v25 = vpop.xlane.xlu0 %76 }
  0xce   :  { %275 = vpow2.f32 %v125_v22  ;;  %v511_v26 = vsub.f32 %v108_v11, %v116_v24  ;;  %v80_v27 = vsub.f32 %v74_v14, %v77_v25 }
  0xcf   :  { %277 = vpow2.f32 %v123_v23 }
  0xd0   :  { %v127_v28 = vmul.f32 1.442695, %v511_v26  ;;  %v82_v29 = vmul.f32 1.442695, %v80_v27 }
  0xd1   :  { %v110_v30 = vpop.xlane.xlu1 %109  ;;  %v79_v31 = vpop.xlane.xlu0 %78 }
  0xd2   :  { %279 = vpow2.f32 %v127_v28  ;;  %v514_v32 = vsub.f32 %v105_v16, %v110_v30  ;;  %v81_v33 = vsub.f32 %v75_v17, %v79_v31 }
  0xd3   :  { %281 = vpow2.f32 %v82_v29 }
  0xd4   :  { %v121_v34 = vmul.f32 1.442695, %v514_v32  ;;  %v84_v35 = vmul.f32 1.442695, %v81_v33 }
  0xd6   :  { %283 = vpow2.f32 %v121_v34 }
  0xd7   :  { %285 = vpow2.f32 %v84_v35 }
  0xd8   :  { %v276_v36 = vpop.eup %275 }
  0xd9   :  { %v278_v37 = vpop.eup %277  ;;  %133 = vadd.xlane.f32.xlu0 %v276_v36 }
  0xda   :  { %131 = vadd.xlane.f32.xlu1 %v278_v37 }
  0xdc   :  { %v280_v38 = vpop.eup %279 }
  0xdd   :  { %v282_v39 = vpop.eup %281 }
  0xde   :  { %135 = vadd.xlane.f32.xlu1 %v280_v38  ;;  %86 = vadd.xlane.f32.xlu0 %v282_v39 }
  0xe0   :  { %v284_v40 = vpop.eup %283 }
  0xe1   :  { %v286_v41 = vpop.eup %285 }
  0xe2   :  { %129 = vadd.xlane.f32.xlu1 %v284_v40  ;;  %88 = vadd.xlane.f32.xlu0 %v286_v41 }
 0x166   :  { %v134_v42 = vpop.xlane.xlu0 %133 }
 0x167   :  { %v132_v43 = vpop.xlane.xlu1 %131  ;;  %287 = vrcp.f32 %v134_v42 }
 0x168   :  { %289 = vrcp.f32 %v132_v43 }
 0x16b   :  { %v136_v44 = vpop.xlane.xlu1 %135  ;;  %v87_v45 = vpop.xlane.xlu0 %86 }
 0x16c   :  { %291 = vrcp.f32 %v136_v44 }
 0x16d   :  { %293 = vrcp.f32 %v87_v45 }
 0x16f   :  { %v130_v46 = vpop.xlane.xlu1 %129  ;;  %v89_v47 = vpop.xlane.xlu0 %88 }
 0x170   :  { %295 = vrcp.f32 %v130_v46 }
 0x171   :  { %v288_v48 = vpop.eup %287  ;;  %297 = vrcp.f32 %v89_v47 }
 0x172   :  { %v290_v49 = vpop.eup %289  ;;  %v143_v50 = vmul.f32 %v288_v48, %v134_v42  ;;  %299 = vlog2.f32 %v132_v43 }
 0x173   :  { %v142_v51 = vmul.f32 %v290_v49, %v132_v43  ;;  %301 = vlog2.f32 %v134_v42 }
 0x174   :  { %v147_v53 = vsub.f32 2.0, %v143_v50  ;;  %303 = vlog2.f32 %v136_v44 }
 0x175   :  { %v146_v54 = vsub.f32 2.0, %v142_v51  ;;  %305 = vlog2.f32 %v130_v46 }
 0x176   :  { %v292_v52 = vpop.eup %291  ;;  %v151_v60 = vmul.f32 %v288_v48, %v147_v53 }
 0x177   :  { %v144_v55 = vmul.f32 %v292_v52, %v136_v44  ;;  %v294_v56 = vpop.eup %293  ;;  %v150_v61 = vmul.f32 %v290_v49, %v146_v54 }
 0x178   :  { %v92_v58 = vmul.f32 %v294_v56, %v87_v45  ;;  %v155_v6 = vmul.f32 %v276_v36, %v151_v60 }
 0x179   :  { %v148_v57 = vsub.f32 2.0, %v144_v55  ;;  %v154_v7 = vmul.f32 %v278_v37, %v150_v61 }
 0x17a   :  { %v296_v59 = vpop.eup %295  ;;  %v94_v63 = vsub.f32 2.0, %v92_v58 }
 0x17b   :  { %v152_v62 = vmul.f32 %v292_v52, %v148_v57  ;;  %v141_v0 = vmul.f32 %v296_v59, %v130_v46  ;;  %v298_v1 = vpop.eup %297 }
 0x17c   :  { %v96_v3 = vmul.f32 %v294_v56, %v94_v63  ;;  %v93_v5 = vmul.f32 %v298_v1, %v89_v47  ;;  %v300_v43 = vpop.eup %299 }
 0x17d   :  { %v156_v2 = vmul.f32 %v280_v38, %v152_v62  ;;  %v145_v4 = vsub.f32 2.0, %v141_v0  ;;  %v302_v44 = vpop.eup %301  ;;  %v160_v47 = vmul.f32 0.6931472, %v300_v43 }
 0x17e   :  { %v98_v8 = vmul.f32 %v282_v39, %v96_v3  ;;  %v95_v10 = vsub.f32 2.0, %v93_v5  ;;  %v304_v45 = vpop.eup %303  ;;  %v162_v46 = vmul.f32 0.6931472, %v302_v44 }
 0x17f   :  { %v149_v9 = vmul.f32 %v296_v59, %v145_v4  ;;  %v306_v48 = vpop.eup %305  ;;  %v164_v51 = vmul.f32 0.6931472, %v304_v45  ;;  %v166_v53 = vsub.f32 %v507_v21, %v160_v47 }
 0x180   :  { %v170_v11 = vsub.f32 %v98_v8, %v154_v7  ;;  %v178_v13 = vsub.f32 %v98_v8, %v155_v6  ;;  %v186_v14 = vsub.f32 %v98_v8, %v156_v2  ;;  %v97_v16 = vmul.f32 %v298_v1, %v95_v10 }
 0x181   :  { %v153_v15 = vmul.f32 %v284_v40, %v149_v9  ;;  %v169_v49 = vsub.f32 0.0, %v98_v8  ;;  %v158_v56 = vmul.f32 0.6931472, %v306_v48  ;;  %v167_v57 = vsub.f32 %v505_v20, %v162_v46 }
 0x182   :  { %v171_v17 = vand.u32 2147483647, %v170_v11  ;;  %v179_v18 = vand.u32 2147483647, %v178_v13  ;;  %v187_v19 = vand.u32 2147483647, %v186_v14  ;;  %v99_v22 = vmul.f32 %v286_v41, %v97_v16 }
 0x183   :  { %v168_v61 = vsub.f32 %v511_v26, %v164_v51  ;;  %v57_v26 = vrot.slane %v503_v12, 4 }
 0x184   :  { %v172_v23 = vsub.f32 0.0, %v171_v17  ;;  %v180_v24 = vsub.f32 0.0, %v179_v18  ;;  %v188_v25 = vsub.f32 0.0, %v187_v19  ;;  %v195_v27 = vsub.f32 %v99_v22, %v153_v15 }
 0x185   :  { %v203_v28 = vsub.f32 %v99_v22, %v155_v6  ;;  %v211_v29 = vsub.f32 %v99_v22, %v156_v2  ;;  %v194_v63 = vsub.f32 0.0, %v99_v22  ;;  %v165_v2 = vsub.f32 %v514_v32, %v158_v56 }
 0x186   :  { %v173_v30 = vmul.f32 1.442695, %v172_v23  ;;  %v181_v31 = vmul.f32 1.442695, %v180_v24  ;;  %v189_v33 = vmul.f32 1.442695, %v188_v25  ;;  %v58_v15 = vadd.f32 %v57_v26, %v503_v12 }
 0x187   :  { %v196_v34 = vand.u32 2147483647, %v195_v27  ;;  %v204_v35 = vand.u32 2147483647, %v203_v28  ;;  %v212_v36 = vand.u32 2147483647, %v211_v29 }
 0x188   :  { %307 = vpow2.f32 %v173_v30  ;;  %v59_v16 = vrot.slane %v58_v15, 2 }
 0x189   :  { %309 = vpow2.f32 %v181_v31  ;;  %v197_v37 = vsub.f32 0.0, %v196_v34  ;;  %v205_v38 = vsub.f32 0.0, %v204_v35  ;;  %v213_v39 = vsub.f32 0.0, %v212_v36 }
 0x18a   :  { %311 = vpow2.f32 %v189_v33  ;;  %v60_v32 = vadd.f32 %v59_v16, %v58_v15 }
 0x18b   :  { %v198_v40 = vmul.f32 1.442695, %v197_v37  ;;  %v206_v41 = vmul.f32 1.442695, %v205_v38  ;;  %v214_v42 = vmul.f32 1.442695, %v213_v39 }
 0x18c   :  { %v61_v17 = vrot.slane %v60_v32, 1 }
 0x18d   :  { %313 = vpow2.f32 %v198_v40 }
 0x18e   :  { %315 = vpow2.f32 %v206_v41  ;;  %v62_v18 = vadd.f32 %v61_v17, %v60_v32 }
 0x18f   :  { %317 = vpow2.f32 %v214_v42 }
 0x190   :  { %63 = vst [vmem:[#allocation10] sm:$0x1] %v62_v18 }
 0x192   :  { %v308_v50 = vpop.eup %307 }
 0x193   :  { %v310_v52 = vpop.eup %309  ;;  %v175_v54 = vmul.f32 %v308_v50, %v169_v49 }
 0x194   :  { %v312_v55 = vpop.eup %311  ;;  %v183_v58 = vmul.f32 %v310_v52, %v169_v49 }
 0x195   :  { %v176_v59 = vmul.f32 %v175_v54, %v166_v53  ;;  %v191_v60 = vmul.f32 %v312_v55, %v169_v49 }
 0x196   :  { %v184_v62 = vmul.f32 %v183_v58, %v167_v57 }
 0x197   :  { %v314_v0 = vpop.eup %313  ;;  %v192_v4 = vmul.f32 %v191_v60, %v168_v61 }
 0x198   :  { %v316_v1 = vpop.eup %315  ;;  %v185_v3 = vadd.f32 %v184_v62, %v176_v59  ;;  %v200_v5 = vmul.f32 %v314_v0, %v194_v63 }
 0x199   :  { %v318_v21 = vpop.eup %317  ;;  %v208_v6 = vmul.f32 %v316_v1, %v194_v63 }
 0x19a   :  { %v193_v7 = vadd.f32 %v192_v4, %v185_v3  ;;  %v201_v8 = vmul.f32 %v200_v5, %v165_v2  ;;  %v216_v9 = vmul.f32 %v318_v21, %v194_v63 }
 0x19b   :  { %v209_v10 = vmul.f32 %v208_v6, %v167_v57 }
 0x19c   :  { %v202_v20 = vadd.f32 %v201_v8, %v193_v7  ;;  %v217_v13 = vmul.f32 %v216_v9, %v168_v61 }
 0x19e   :  { %v210_v11 = vadd.f32 %v209_v10, %v202_v20 }
 0x1a0   :  { %v218_v14 = vadd.f32 %v217_v13, %v210_v11 }
 0x1a2   :  { %219 = vadd.xlane.f32.xlu0 %v218_v14 }
 0x1a3   :  { %384 = shalt.err (!%p381_p9)
}
 0x1a4   :  { %s385_s10 = scalar_lea.hbm %s552_s5, 16 }
 0x1a5   :  { %p386_p10 = scmp.ne.s32.totalorder %s552_s5, %s385_s10  ;;  %p389_p11 = scmp.lt.u32.totalorder %s385_s10, %s552_s5 }
 0x1a7   :  { %p391_p12 = pnand %p389_p11, %p386_p10 }
 0x1a9   :  { %394 = shalt.err (!%p391_p12)
}
 0x1aa   :  { %252 = dma.vmem_to_hbm [thread:$0]  %s250_s3, 16, %s552_s5, [#allocation11]   ;;  %vm231_vm0 = vcmask 0  }
 0x1ab   :  { %s264_s16 = sld [smem:[#allocation3 + $0x2]]  ;;  %s433_s17 = smov [#allocation9]  }
 0x1ac   :  { %s239_s18 = sshll.u32 %s433_s17, 4  ;;  %s240_s18 = int_to_ptr.vmem [resolvable:$true] %s239_s18 }
 0x1ad   :  { %s395_s20 = scalar_lea.vmem %s240_s18, 16  ;;  %s399_s5 = scalar_lea.vmem %s240_s18, 32 }
 0x1ae   :  { %p396_p13 = scmp.ne.s32.totalorder %s240_s18, %s395_s20  ;;  %p400_p0 = scmp.lt.s32.totalorder %s240_s18, %s240_s18 }
 0x1af   :  { %p401_p1 = scmp.lt.s32.totalorder %s399_s5, %s395_s20 }
 0x1b1   :  { %v229_v28 = vstv %s264_s16  ;;  %p402_p2 = por %p401_p1, %p400_p0 }
 0x1b3   :  { %p403_p3 = pnand %p402_p2, %p396_p13 }
 0x22f   :  { %v220_v12 = vpop.xlane.xlu0 %219 }
 0x230   :  { %v221_v19 = vrot.slane %v220_v12, 4 }
 0x232   :  { %v222_v22 = vadd.f32 %v221_v19, %v220_v12 }
 0x234   :  { %v223_v23 = vrot.slane %v222_v22, 2 }
 0x236   :  { %v224_v24 = vadd.f32 %v223_v23, %v222_v22 }
 0x238   :  { %v225_v25 = vrot.slane %v224_v24, 1 }
 0x23a   :  { %v226_v27 = vadd.f32 %v225_v25, %v224_v24 }
 0x23c   :  { %266 = vpush %v226_v27 }
 0x26d   :  { %s267_s19 = spop %266 }
 0x26e   :  { %v228_v29 = vstv %s267_s19 }
 0x26f   :  { %v230_v30 = vmul.f32 %v229_v28, %v228_v29 }
 0x271   :  { %232 = vst.msk [vmem:[#allocation9] sm:$0x1] %vm231_vm0, %v230_v30 }
 0x272   :  { %406 = shalt.err (!%p403_p3)
}
 0x273   :  { %s407_s23 = scalar_lea.hbm %s551_s4, 16 }
 0x274   :  { %p408_p4 = scmp.ne.s32.totalorder %s551_s4, %s407_s23  ;;  %p411_p5 = scmp.lt.u32.totalorder %s407_s23, %s551_s4 }
 0x276   :  { %p413_p6 = pnand %p411_p5, %p408_p4 }
 0x278   :  { %416 = shalt.err (!%p413_p6)
}
 0x279   :  { %242 = dma.vmem_to_hbm [thread:$0]  %s240_s18, 16, %s551_s4, [#allocation6]  }
 0x27a   :  { %423 = dma.done.wait [#allocation6], 16  }
 0x27b   :  { %424 = vsyncadd [#allocation6], 4294967280 }
 0x27c   :  { %425 = dma.done.wait [#allocation11], 16  }
 0x27d   :  { %426 = vsyncadd [#allocation11], 4294967280 }
 0x27e   :  { %259 = vsyncpa [#allocation5], 1 }
 0x27f   :  { %260 = vsyncpa [#allocation8], 1 }
 0x280   :  { %261 = vsyncpa [#allocation6], 1 }
 0x281   :  { %262 = vsyncpa [#allocation11], 1 }

</bundles_post_ra>
